<compile_context>
chip_gen: v7x
topology: tpu7x:2x2x1
jax: 0.10.0
libtpu: 0.0.40
codegen_flags: <defaults>
</compile_context>

<pallas_src>
import functools

import jax
import jax.numpy as jnp
from jax.experimental import pallas as pl
from jax.experimental.pallas import tpu as pltpu


def _aggregate_project_kernel(attn_ref, x_ref, wv_ref, wp_ref, o_ref,
                              v_scr, agg_scr, *, q_tile):
    # attn_ref: (1, heads, q_tile, hw)   attention tile for one batch element
    # x_ref   : (1, hw, c)               fmap, channel-last (full rows, resident across qi)
    # wv_ref  : (c, inner)  bf16         to_v weight^T, columns ordered (head, d)
    # wp_ref  : (inner, c)  bf16         gamma * project weight^T
    # o_ref   : (1, q_tile, c)           fmap + gamma * project(aggregate), this query tile
    # v_scr   : (hw, inner) bf16         v for all heads (persistent across query tiles)
    # agg_scr : (q_tile, inner) bf16     per-head aggregates, staged for the fused projection
    heads = attn_ref.shape[1]
    inner = wv_ref.shape[1]
    dh = inner // heads
    hw = x_ref.shape[1]
    qi = pl.program_id(1)

    # Compute v once per batch element (query axis is "arbitrary" so the
    # scratch persists across the query tiles of this batch element).
    @pl.when(qi == 0)
    def _():
        x_bf = x_ref[0].astype(jnp.bfloat16)                              # (hw, c)
        v_scr[...] = jnp.dot(x_bf, wv_ref[...],
                             preferred_element_type=jnp.float32).astype(v_scr.dtype)

    # Per-head attention apply (bf16 MXU matmuls), staged at lane-aligned
    # column offsets (dh is a multiple of 128 with the module defaults).
    for hd in range(heads):
        a = attn_ref[0, hd].astype(jnp.bfloat16)                          # (q_tile, hw)
        vh = v_scr[:, hd * dh:(hd + 1) * dh]                              # (hw, dh)  bf16
        agg = jnp.dot(a, vh, preferred_element_type=jnp.float32)          # (q_tile, dh) f32
        agg_scr[:, hd * dh:(hd + 1) * dh] = agg.astype(agg_scr.dtype)

    # One fused K=inner projection (gamma folded into wp), f32 accumulation.
    proj = jnp.dot(agg_scr[...], wp_ref[...],
                   preferred_element_type=jnp.float32)                    # (q_tile, c)

    if q_tile == hw:
        x_tile = x_ref[0].astype(jnp.float32)
    else:
        row0 = pl.multiple_of(qi * q_tile, q_tile)
        x_tile = x_ref[0, pl.ds(row0, q_tile), :].astype(jnp.float32)
    o_ref[0] = (x_tile + proj).astype(o_ref.dtype)


def _aggregate_noproject_kernel(attn_ref, x_ref, wv_ref, o_ref, v_scr, *, q_tile):
    # Specialized dim == inner_dim path: no projection matmul at all.
    # gamma is folded into wv in the wrapper, so out = x + attn @ v'.
    heads = attn_ref.shape[1]
    inner = wv_ref.shape[1]
    dh = inner // heads
    hw = x_ref.shape[1]
    qi = pl.program_id(1)

    @pl.when(qi == 0)
    def _():
        x_bf = x_ref[0].astype(jnp.bfloat16)                              # (hw, c==inner)
        v_scr[...] = jnp.dot(x_bf, wv_ref[...],
                             preferred_element_type=jnp.float32).astype(v_scr.dtype)

    if q_tile == hw:
        x_tile = x_ref[0].astype(jnp.float32)
    else:
        row0 = pl.multiple_of(qi * q_tile, q_tile)
        x_tile = x_ref[0, pl.ds(row0, q_tile), :].astype(jnp.float32)

    for hd in range(heads):
        a = attn_ref[0, hd].astype(jnp.bfloat16)                          # (q_tile, hw)
        vh = v_scr[:, hd * dh:(hd + 1) * dh]                              # (hw, dh)
        agg = jnp.dot(a, vh, preferred_element_type=jnp.float32)          # (q_tile, dh) f32
        o_ref[0, :, hd * dh:(hd + 1) * dh] = (
            x_tile[:, hd * dh:(hd + 1) * dh] + agg).astype(o_ref.dtype)


def _pick_q_tile(hw, heads, attn_itemsize):
    """Largest query tile whose attn block stays ~<=4 MiB (per buffer)."""
    q_tile = hw
    while (q_tile % 2 == 0 and q_tile // 2 >= 256
           and heads * q_tile * hw * attn_itemsize > (4 << 20)):
        q_tile //= 2
    if q_tile != hw and q_tile % 8 != 0:   # keep sublane alignment
        q_tile = hw
    return q_tile


def aggregate(attn, fmap, to_v_weight, project_weight, gamma, heads):
    """Pallas implementation of Aggregate.forward.

    attn          : (b, heads, h*w, h*w)
    fmap          : (b, dim, h, w)
    to_v_weight   : (inner_dim, dim)      1x1-conv weight (kernel dims squeezed)
    project_weight: (dim, inner_dim) or None
    gamma         : scalar
    returns       : (b, dim, h, w)
    """
    b, c, h, w = fmap.shape
    inner = to_v_weight.shape[0]
    hw = h * w
    has_project = project_weight is not None
    if not has_project:
        assert c == inner, "project=None requires dim == heads*dim_head"

    # Layout plumbing (plain JAX / XLA): NCHW -> channel-last (b, hw, c).
    # TODO(synk): do this transpose in-kernel (XLU) / take channel-last input
    # to remove two HBM round-trips at mem-bound sizes.
    x = jnp.transpose(fmap.reshape(b, c, hw), (0, 2, 1))                  # (b, hw, c)

    if has_project:
        wv_t = jnp.transpose(to_v_weight).astype(jnp.bfloat16)            # (c, inner)
        wp_t = (gamma * jnp.transpose(project_weight)).astype(jnp.bfloat16)  # (inner, c)
    else:
        # fold gamma into the (linear) to_v weight; no projection matmul needed.
        wv_t = (gamma * jnp.transpose(to_v_weight)).astype(jnp.bfloat16)  # (c, inner)
        wp_t = None

    q_tile = _pick_q_tile(hw, heads, attn.dtype.itemsize)
    nq = hw // q_tile

    # Scoped-VMEM estimate (double-buffered blocks + persistent scratch); only
    # raise the limit above the smallest default (16 MiB on v5e) when needed.
    attn_blk = heads * q_tile * hw * attn.dtype.itemsize
    x_blk = hw * c * fmap.dtype.itemsize
    wv_blk = c * inner * 2
    wp_blk = inner * c * 2 if has_project else 0
    out_blk = q_tile * c * fmap.dtype.itemsize
    scratch_bytes = hw * inner * 2 + (q_tile * inner * 2 if has_project else 0)
    vmem_needed = 2 * (attn_blk + x_blk + wv_blk + wp_blk + out_blk) + scratch_bytes
    vmem_limit = None
    if vmem_needed > (16 << 20):
        vmem_limit = min(int(vmem_needed * 5 // 4), 48 << 20)

    attn_spec = pl.BlockSpec((1, heads, q_tile, hw), lambda bi, qi: (bi, 0, qi, 0))
    x_spec = pl.BlockSpec((1, hw, c), lambda bi, qi: (bi, 0, 0))      # resident across qi
    wv_spec = pl.BlockSpec((c, inner), lambda bi, qi: (0, 0))
    out_spec = pl.BlockSpec((1, q_tile, c), lambda bi, qi: (bi, qi, 0))

    compiler_params = pltpu.CompilerParams(
        # batch across megacore TCs; query axis must be sequential because v
        # lives in a persistent VMEM scratch computed at qi == 0.
        dimension_semantics=("parallel", "arbitrary"),
        vmem_limit_bytes=vmem_limit,
    )

    if has_project:
        kernel = functools.partial(_aggregate_project_kernel, q_tile=q_tile)
        in_specs = [attn_spec, x_spec, wv_spec,
                    pl.BlockSpec((inner, c), lambda bi, qi: (0, 0))]
        scratch_shapes = [pltpu.VMEM((hw, inner), jnp.bfloat16),
                          pltpu.VMEM((q_tile, inner), jnp.bfloat16)]
        operands = (attn, x, wv_t, wp_t)
    else:
        kernel = functools.partial(_aggregate_noproject_kernel, q_tile=q_tile)
        in_specs = [attn_spec, x_spec, wv_spec]
        scratch_shapes = [pltpu.VMEM((hw, inner), jnp.bfloat16)]
        operands = (attn, x, wv_t)

    out = pl.pallas_call(
        kernel,
        out_shape=jax.ShapeDtypeStruct((b, hw, c), fmap.dtype),
        grid_spec=pltpu.PrefetchScalarGridSpec(
            num_scalar_prefetch=0,
            grid=(b, nq),
            in_specs=in_specs,
            out_specs=out_spec,
            scratch_shapes=scratch_shapes,
        ),
        compiler_params=compiler_params,
    )(*operands)

    # channel-last -> NCHW (layout plumbing in XLA, outside the kernel).
    return jnp.transpose(out, (0, 2, 1)).reshape(b, c, h, w)


def aggregate_reference(attn, fmap, to_v_weight, project_weight, gamma, heads):
    """Pure-JAX f32 reference matching the PyTorch forward."""
    b, c, h, w = fmap.shape
    inner = to_v_weight.shape[0]
    dh = inner // heads
    v = jnp.einsum('oc,bcxy->boxy', to_v_weight, fmap)                    # (b, inner, h, w)
    v = v.reshape(b, heads, dh, h, w).transpose(0, 1, 3, 4, 2).reshape(b, heads, h * w, dh)
    out = jnp.einsum('bhij,bhjd->bhid', attn, v)                          # (b, heads, hw, dh)
    out = out.reshape(b, heads, h, w, dh).transpose(0, 1, 4, 2, 3).reshape(b, inner, h, w)
    if project_weight is not None:
        out = jnp.einsum('oc,bcxy->boxy', project_weight, out)
    return fmap + gamma * out


if __name__ == "__main__":
    # Module defaults heads=4, dim_head=128; small spatial / batch for the test.
    batch, heads, dim_head = 2, 4, 128
    inner_dim = heads * dim_head                                          # 512
    h = w = 8
    hw = h * w

    key = jax.random.PRNGKey(0)
    k_attn, k_fmap, k_wv, k_wp, k_gamma, k_fmap2, k_wv2 = jax.random.split(key, 7)

    attn = jax.nn.softmax(
        jax.random.normal(k_attn, (batch, heads, hw, hw), dtype=jnp.float32), axis=-1)
    gamma = jax.random.normal(k_gamma, (), dtype=jnp.float32)

    # --- path 1: dim != inner_dim -> projection conv present -------------------
    dim = 128
    fmap = jax.random.normal(k_fmap, (batch, dim, h, w), dtype=jnp.float32)
    to_v_weight = jax.random.normal(k_wv, (inner_dim, dim), dtype=jnp.float32) * (dim ** -0.5)
    project_weight = jax.random.normal(k_wp, (dim, inner_dim), dtype=jnp.float32) * (inner_dim ** -0.5)

    out = jax.block_until_ready(aggregate(attn, fmap, to_v_weight, project_weight, gamma, heads))
    ref = aggregate_reference(attn, fmap, to_v_weight, project_weight, gamma, heads)
    assert out.shape == (batch, dim, h, w), out.shape
    # bf16 MXU matmuls with f32 accumulation -> loosened tolerance vs f32 reference.
    assert jnp.allclose(out, ref, rtol=2e-2, atol=2e-2), float(jnp.max(jnp.abs(out - ref)))

    # --- path 2: dim == inner_dim -> project=None (specialized, no wp matmul) --
    dim2 = inner_dim
    fmap2 = jax.random.normal(k_fmap2, (batch, dim2, h, w), dtype=jnp.float32)
    to_v_weight2 = jax.random.normal(k_wv2, (inner_dim, dim2), dtype=jnp.float32) * (dim2 ** -0.5)

    out2 = jax.block_until_ready(aggregate(attn, fmap2, to_v_weight2, None, gamma, heads))
    ref2 = aggregate_reference(attn, fmap2, to_v_weight2, None, gamma, heads)
    assert out2.shape == (batch, dim2, h, w), out2.shape
    assert jnp.allclose(out2, ref2, rtol=2e-2, atol=2e-2), float(jnp.max(jnp.abs(out2 - ref2)))

    print("KERNEL_OK")
</pallas_src>

<mosaic_0001>
module attributes {stable_mosaic.version = 11 : i64} {
  func.func @_aggregate_project_kernel(%arg0: i32, %arg1: i32, %arg2: memref<1x4x64x64xf32, #tpu.memory_space<vmem>>, %arg3: memref<1x64x128xf32, #tpu.memory_space<vmem>>, %arg4: memref<128x512xbf16, #tpu.memory_space<vmem>>, %arg5: memref<512x128xbf16, #tpu.memory_space<vmem>>, %arg6: memref<1x64x128xf32, #tpu.memory_space<vmem>>, %arg7: memref<64x512xbf16, #tpu.memory_space<vmem>>, %arg8: memref<64x512xbf16, #tpu.memory_space<vmem>>) attributes {dimension_semantics = [#tpu.dimension_semantics<parallel>, #tpu.dimension_semantics<arbitrary>], iteration_bounds = array<i64: 2, 1>, scalar_prefetch = 0 : i64, scratch_operands = 2 : i64, tpu.core_type = #tpu.core_type<tc>, window_params = [{transform_indices = @transform_0, window_bounds = array<i64: 1, 4, 64, 64>}, {transform_indices = @transform_1, window_bounds = array<i64: 1, 64, 128>}, {pipeline_mode = #tpu.pipeline_mode<synchronous>, transform_indices = @transform_2, window_bounds = array<i64: 128, 512>}, {pipeline_mode = #tpu.pipeline_mode<synchronous>, transform_indices = @transform_3, window_bounds = array<i64: 512, 128>}, {transform_indices = @transform_4, window_bounds = array<i64: 1, 64, 128>}]} {
    %c0_i32 = arith.constant 0 : i32
    %0 = arith.cmpi eq, %arg1, %c0_i32 : i32
    %1 = arith.extui %0 : i1 to i32
    %c0_i32_0 = arith.constant 0 : i32
    %2 = arith.cmpi ne, %1, %c0_i32_0 : i32
    scf.if %2 {
      %c0_40 = arith.constant 0 : index
      %c0_41 = arith.constant 0 : index
      %c0_42 = arith.constant 0 : index
      %40 = vector.load %arg3[%c0_40, %c0_41, %c0_42] : memref<1x64x128xf32, #tpu.memory_space<vmem>>, vector<1x64x128xf32>
      %41 = vector.shape_cast %40 : vector<1x64x128xf32> to vector<64x128xf32>
      %42 = arith.truncf %41 : vector<64x128xf32> to vector<64x128xbf16>
      %c0_43 = arith.constant 0 : index
      %c0_44 = arith.constant 0 : index
      %43 = vector.load %arg4[%c0_43, %c0_44] : memref<128x512xbf16, #tpu.memory_space<vmem>>, vector<128x512xbf16>
      %cst_45 = arith.constant dense<0.000000e+00> : vector<64x512xf32>
      %44 = tpu.matmul %42, %43, %cst_45 {dimension_numbers = #tpu.dot_dimension_numbers<[1], [0], [0], [1], [0, 0, 1, 1], [], []>} : vector<64x128xbf16>, vector<128x512xbf16>, vector<64x512xf32> -> vector<64x512xf32>
      %45 = arith.truncf %44 : vector<64x512xf32> to vector<64x512xbf16>
      %c0_46 = arith.constant 0 : index
      %c0_47 = arith.constant 0 : index
      %46 = vector.load %arg7[%c0_46, %c0_47] : memref<64x512xbf16, #tpu.memory_space<vmem>>, vector<64x512xbf16>
      tpu.vector_store %arg7[%c0_46, %c0_47], %45 {strides = array<i32>} : memref<64x512xbf16, #tpu.memory_space<vmem>>, vector<64x512xbf16>,
    } else {
    }
    %c0 = arith.constant 0 : index
    %c0_1 = arith.constant 0 : index
    %c0_2 = arith.constant 0 : index
    %c0_3 = arith.constant 0 : index
    %3 = vector.load %arg2[%c0, %c0_1, %c0_2, %c0_3] : memref<1x4x64x64xf32, #tpu.memory_space<vmem>>, vector<1x1x64x64xf32>
    %4 = vector.shape_cast %3 : vector<1x1x64x64xf32> to vector<64x64xf32>
    %5 = arith.truncf %4 : vector<64x64xf32> to vector<64x64xbf16>
    %c0_4 = arith.constant 0 : index
    %c0_5 = arith.constant 0 : index
    %6 = vector.load %arg7[%c0_4, %c0_5] : memref<64x512xbf16, #tpu.memory_space<vmem>>, vector<64x128xbf16>
    %cst = arith.constant dense<0.000000e+00> : vector<64x128xf32>
    %7 = tpu.matmul %5, %6, %cst {dimension_numbers = #tpu.dot_dimension_numbers<[1], [0], [0], [1], [0, 0, 1, 1], [], []>} : vector<64x64xbf16>, vector<64x128xbf16>, vector<64x128xf32> -> vector<64x128xf32>
    %8 = arith.truncf %7 : vector<64x128xf32> to vector<64x128xbf16>
    %c0_6 = arith.constant 0 : index
    %c0_7 = arith.constant 0 : index
    %9 = vector.load %arg8[%c0_6, %c0_7] : memref<64x512xbf16, #tpu.memory_space<vmem>>, vector<64x128xbf16>
    tpu.vector_store %arg8[%c0_6, %c0_7], %8 {strides = array<i32>} : memref<64x512xbf16, #tpu.memory_space<vmem>>, vector<64x128xbf16>,
    %c0_8 = arith.constant 0 : index
    %c1 = arith.constant 1 : index
    %c0_9 = arith.constant 0 : index
    %c0_10 = arith.constant 0 : index
    %10 = vector.load %arg2[%c0_8, %c1, %c0_9, %c0_10] : memref<1x4x64x64xf32, #tpu.memory_space<vmem>>, vector<1x1x64x64xf32>
    %11 = vector.shape_cast %10 : vector<1x1x64x64xf32> to vector<64x64xf32>
    %12 = arith.truncf %11 : vector<64x64xf32> to vector<64x64xbf16>
    %c0_11 = arith.constant 0 : index
    %c128 = arith.constant 128 : index
    %13 = vector.load %arg7[%c0_11, %c128] : memref<64x512xbf16, #tpu.memory_space<vmem>>, vector<64x128xbf16>
    %cst_12 = arith.constant dense<0.000000e+00> : vector<64x128xf32>
    %14 = tpu.matmul %12, %13, %cst_12 {dimension_numbers = #tpu.dot_dimension_numbers<[1], [0], [0], [1], [0, 0, 1, 1], [], []>} : vector<64x64xbf16>, vector<64x128xbf16>, vector<64x128xf32> -> vector<64x128xf32>
    %15 = arith.truncf %14 : vector<64x128xf32> to vector<64x128xbf16>
    %c0_13 = arith.constant 0 : index
    %c128_14 = arith.constant 128 : index
    %16 = vector.load %arg8[%c0_13, %c128_14] : memref<64x512xbf16, #tpu.memory_space<vmem>>, vector<64x128xbf16>
    tpu.vector_store %arg8[%c0_13, %c128_14], %15 {strides = array<i32>} : memref<64x512xbf16, #tpu.memory_space<vmem>>, vector<64x128xbf16>,
    %c0_15 = arith.constant 0 : index
    %c2 = arith.constant 2 : index
    %c0_16 = arith.constant 0 : index
    %c0_17 = arith.constant 0 : index
    %17 = vector.load %arg2[%c0_15, %c2, %c0_16, %c0_17] : memref<1x4x64x64xf32, #tpu.memory_space<vmem>>, vector<1x1x64x64xf32>
    %18 = vector.shape_cast %17 : vector<1x1x64x64xf32> to vector<64x64xf32>
    %19 = arith.truncf %18 : vector<64x64xf32> to vector<64x64xbf16>
    %c0_18 = arith.constant 0 : index
    %c256 = arith.constant 256 : index
    %20 = vector.load %arg7[%c0_18, %c256] : memref<64x512xbf16, #tpu.memory_space<vmem>>, vector<64x128xbf16>
    %cst_19 = arith.constant dense<0.000000e+00> : vector<64x128xf32>
    %21 = tpu.matmul %19, %20, %cst_19 {dimension_numbers = #tpu.dot_dimension_numbers<[1], [0], [0], [1], [0, 0, 1, 1], [], []>} : vector<64x64xbf16>, vector<64x128xbf16>, vector<64x128xf32> -> vector<64x128xf32>
    %22 = arith.truncf %21 : vector<64x128xf32> to vector<64x128xbf16>
    %c0_20 = arith.constant 0 : index
    %c256_21 = arith.constant 256 : index
    %23 = vector.load %arg8[%c0_20, %c256_21] : memref<64x512xbf16, #tpu.memory_space<vmem>>, vector<64x128xbf16>
    tpu.vector_store %arg8[%c0_20, %c256_21], %22 {strides = array<i32>} : memref<64x512xbf16, #tpu.memory_space<vmem>>, vector<64x128xbf16>,
    %c0_22 = arith.constant 0 : index
    %c3 = arith.constant 3 : index
    %c0_23 = arith.constant 0 : index
    %c0_24 = arith.constant 0 : index
    %24 = vector.load %arg2[%c0_22, %c3, %c0_23, %c0_24] : memref<1x4x64x64xf32, #tpu.memory_space<vmem>>, vector<1x1x64x64xf32>
    %25 = vector.shape_cast %24 : vector<1x1x64x64xf32> to vector<64x64xf32>
    %26 = arith.truncf %25 : vector<64x64xf32> to vector<64x64xbf16>
    %c0_25 = arith.constant 0 : index
    %c384 = arith.constant 384 : index
    %27 = vector.load %arg7[%c0_25, %c384] : memref<64x512xbf16, #tpu.memory_space<vmem>>, vector<64x128xbf16>
    %cst_26 = arith.constant dense<0.000000e+00> : vector<64x128xf32>
    %28 = tpu.matmul %26, %27, %cst_26 {dimension_numbers = #tpu.dot_dimension_numbers<[1], [0], [0], [1], [0, 0, 1, 1], [], []>} : vector<64x64xbf16>, vector<64x128xbf16>, vector<64x128xf32> -> vector<64x128xf32>
    %29 = arith.truncf %28 : vector<64x128xf32> to vector<64x128xbf16>
    %c0_27 = arith.constant 0 : index
    %c384_28 = arith.constant 384 : index
    %30 = vector.load %arg8[%c0_27, %c384_28] : memref<64x512xbf16, #tpu.memory_space<vmem>>, vector<64x128xbf16>
    tpu.vector_store %arg8[%c0_27, %c384_28], %29 {strides = array<i32>} : memref<64x512xbf16, #tpu.memory_space<vmem>>, vector<64x128xbf16>,
    %c0_29 = arith.constant 0 : index
    %c0_30 = arith.constant 0 : index
    %31 = vector.load %arg8[%c0_29, %c0_30] : memref<64x512xbf16, #tpu.memory_space<vmem>>, vector<64x512xbf16>
    %c0_31 = arith.constant 0 : index
    %c0_32 = arith.constant 0 : index
    %32 = vector.load %arg5[%c0_31, %c0_32] : memref<512x128xbf16, #tpu.memory_space<vmem>>, vector<512x128xbf16>
    %cst_33 = arith.constant dense<0.000000e+00> : vector<64x128xf32>
    %33 = tpu.matmul %31, %32, %cst_33 {dimension_numbers = #tpu.dot_dimension_numbers<[1], [0], [0], [1], [0, 0, 1, 1], [], []>} : vector<64x512xbf16>, vector<512x128xbf16>, vector<64x128xf32> -> vector<64x128xf32>
    %c0_34 = arith.constant 0 : index
    %c0_35 = arith.constant 0 : index
    %c0_36 = arith.constant 0 : index
    %34 = vector.load %arg3[%c0_34, %c0_35, %c0_36] : memref<1x64x128xf32, #tpu.memory_space<vmem>>, vector<1x64x128xf32>
    %35 = vector.shape_cast %34 : vector<1x64x128xf32> to vector<64x128xf32>
    %36 = arith.addf %35, %33 : vector<64x128xf32>
    %c0_37 = arith.constant 0 : index
    %c0_38 = arith.constant 0 : index
    %c0_39 = arith.constant 0 : index
    %37 = vector.load %arg6[%c0_37, %c0_38, %c0_39] : memref<1x64x128xf32, #tpu.memory_space<vmem>>, vector<1x64x128xf32>
    %38 = vector.shape_cast %37 : vector<1x64x128xf32> to vector<64x128xf32>
    %39 = vector.shape_cast %36 : vector<64x128xf32> to vector<1x64x128xf32>
    tpu.vector_store %arg6[%c0_37, %c0_38, %c0_39], %39 {strides = array<i32>} : memref<1x64x128xf32, #tpu.memory_space<vmem>>, vector<1x64x128xf32>,
    return
  }
  func.func @transform_0(%arg0: i32, %arg1: i32) -> (i32, i32, i32, i32) {
    %c0_i32 = arith.constant 0 : i32
    %c0_i32_0 = arith.constant 0 : i32
    %c0_i32_1 = arith.constant 0 : i32
    return %arg0, %c0_i32, %arg1, %c0_i32_0 : i32, i32, i32, i32
  }
  func.func @transform_1(%arg0: i32, %arg1: i32) -> (i32, i32, i32) {
    %c0_i32 = arith.constant 0 : i32
    %c0_i32_0 = arith.constant 0 : i32
    %c0_i32_1 = arith.constant 0 : i32
    return %arg0, %c0_i32, %c0_i32_0 : i32, i32, i32
  }
  func.func @transform_2(%arg0: i32, %arg1: i32) -> (i32, i32) {
    %c0_i32 = arith.constant 0 : i32
    %c0_i32_0 = arith.constant 0 : i32
    %c0_i32_1 = arith.constant 0 : i32
    return %c0_i32, %c0_i32_0 : i32, i32
  }
  func.func @transform_3(%arg0: i32, %arg1: i32) -> (i32, i32) {
    %c0_i32 = arith.constant 0 : i32
    %c0_i32_0 = arith.constant 0 : i32
    %c0_i32_1 = arith.constant 0 : i32
    return %c0_i32, %c0_i32_0 : i32, i32
  }
  func.func @transform_4(%arg0: i32, %arg1: i32) -> (i32, i32, i32) {
    %c0_i32 = arith.constant 0 : i32
    %c0_i32_0 = arith.constant 0 : i32
    return %arg0, %arg1, %c0_i32 : i32, i32, i32
  }
}

</mosaic_0001>

<bundles_post_ra>
// kernel: tpu_custom_call.1
= control target key start
LH: loop header
LB: loop body
LE: loop exit
PB: predicated region body
PF: predicated region fallthrough
CT: control target
= control target key end

     0   :  { %s2826_s0 = inlined_call_operand.hbm [shape: f32[2,4,64,64], index: 0, kind: input, shape index: {}]   ;;  %s2827_s1 = inlined_call_operand.hbm [shape: f32[2,64,128], index: 1, kind: input, shape index: {}]   ;;  %s2828_s2 = inlined_call_operand.hbm [shape: bf16[128,512], index: 2, kind: input, shape index: {}]   ;;  %s2829_s3 = inlined_call_operand.hbm [shape: bf16[512,128], index: 3, kind: input, shape index: {}]   ;;  %s2830_s4 = inlined_call_operand.hbm [shape: f32[2,64,128], index: 4, kind: output, shape index: {}]  }
   0x1   :  { %2835 = sst [smem:[#allocation19_spill]] %s2826_s0 }
   0x2   :  { %2836 = sst [smem:[#allocation20_spill]] %s2828_s2 }
   0x3   :  { %2837 = sst [smem:[#allocation21_spill]] %s2829_s3 }
   0x4   :  { %9 = vsyncpa [#allocation5], 0 }
   0x5   :  { %11 = vsyncpa [#allocation5 + $0x1], 0 }
   0x6   :  { %12 = vsyncpa [#allocation8], 0 }
   0x7   :  { %14 = vsyncpa [#allocation8 + $0x1], 0 }
   0x8   :  { %15 = vsyncpa [#allocation11], 0 }
   0x9   :  { %16 = vsyncpa [#allocation6], 0 }
   0xa   :  { %18 = vsyncpa [#allocation6 + $0x1], 0  ;;  %s2405_s15 = smov 0   ;;  %s2407_s16 = smov 0  }
   0xb   :  { %s2409_s17 = smov 0   ;;  %s2411_s18 = smov 0  }
   0xc   :  { %s2413_s19 = smov 0   ;;  %s2415_s20 = smov 0  }
   0xd LB: > { %s2436_s21 = sadd.s32 4294967295, %s2364_s20   ;;  %s1672_s22 = sadd.s32 4294967294, %s2364_s20   ;;  %s2364_s20 = sphi %s2415_s20, %s24_s20   ;;  %s2360_s19 = sphi %s2413_s19, %s2862_s19   ;;  %s2356_s18 = sphi %s2411_s18, %s2861_s18   ;;  %s2352_s17 = sphi %s2409_s17, %s2860_s17   ;;  %s2348_s16 = sphi %s2407_s16, %s2859_s16   ;;  %s2344_s15 = sphi %s2405_s15, %s2858_s15  }
   0xe   : > { %p58_p0 = scmp.ne.s32.totalorder %s2348_s16, %s2344_s15  ;;  %p2831_p1 = scmp.eq.s32.totalorder %s2436_s21, 0 }
   0xf   : > { %p158_p3 = scmp.eq.s32.totalorder %s1672_s22, 1  ;;  %p1673_p5 = scmp.ge.s32.totalorder %s2364_s20, 1 }
  0x10   : > { %p2445_p4 = por %p2831_p1, %p58_p0  ;;  %p165_p7 = scmp.lt.s32.totalorder %s2364_s20, 3 }
  0x11   : > { %p2450_p6 = por %p158_p3, %p58_p0  ;;  %s2366_s26 = smov [#allocation9]  }
  0x12   : > { %s2838_s23 = scalar_select %p2445_p4, 1, 0 }
  0x13   : > { %s2839_s24 = scalar_select %p2450_p6, 1, 0 }
  0x14   : > { %p2455_p8 = pnand %p1673_p5, %p165_p7  ;;  %s177_s27 = sshll.u32 %s2366_s26, 4  ;;  %s2459_s27 = int_to_ptr.vmem [resolvable:$true] %s177_s27 }
  0x15   : > { %s2367_s29 = smov [#allocation10]   ;;  %s2842_s2 = sld [smem:[#allocation20_spill]] }
  0x16   : > { %p1991_p9 = pneg %p2455_p8  ;;  %s190_s30 = sshll.u32 %s2367_s29, 4  ;;  %s2470_s30 = int_to_ptr.vmem [resolvable:$true] %s190_s30 }
  0x18   : > { %p2466_p11 = pnand %p1991_p9, %p2831_p1 }
  0x1a   : > { %p2156_p13 = pneg %p2466_p11 }
  0x1b   : > { %s2154_s7 = scalar_lea.hbm %s2842_s2, 4096 }
  0x1c   : > { %p2155_p12 = scmp.ne.s32.totalorder %s2842_s2, %s2154_s7  ;;  %p2161_p5 = scmp.lt.u32.totalorder %s2154_s7, %s2842_s2 }
  0x1e   : > { %p2157_p0 = pnand %p2156_p13, %p2155_p12 }
  0x20   : > { %p2158_p3 = pneg %p2157_p0 }
  0x22   : > { %p2163_p7 = pnand %p2161_p5, %p2158_p3 }
  0x24   : > { %2166 = shalt.err (!%p2163_p7)
}
  0x25   : > { %s2167_s12 = scalar_lea.vmem %s2459_s27, 4096  ;;  %p2175_p2 = scmp.lt.s32.totalorder %s2459_s27, %s2459_s27 }
  0x26   : > { %p2168_p9 = scmp.ne.s32.totalorder %s2459_s27, %s2167_s12  ;;  %p2176_p12 = scmp.lt.s32.totalorder %s2167_s12, %s2167_s12 }
  0x28   : > { %p2170_p10 = pnand %p2168_p9, %p2156_p13  ;;  %p2177_p0 = por %p2176_p12, %p2175_p2 }
  0x2a   : > { %p2171_p1 = pneg %p2170_p10 }
  0x2c   : > { %p2178_p6 = pnand %p2177_p0, %p2171_p1 }
  0x2e   : > { %2181 = shalt.err (!%p2178_p6)
}
  0x2f   : > { %s2368_s13 = smov 256   ;;  %s2369_s14 = smov 16  }
  0x30   : > { %1994 = dma.hbm_to_vmem [thread:$0]  (!%p2466_p11), %s2842_s2, 4096, %s2459_s27, [#allocation8], %s2368_s13, %s2368_s13, %s2369_s14  }
  0x31   : > { %s2843_s3 = sld [smem:[#allocation21_spill]] }
  0x37   : > { %s2182_s6 = scalar_lea.hbm %s2843_s3, 4096 }
  0x38   : > { %p2183_p2 = scmp.ne.s32.totalorder %s2843_s3, %s2182_s6  ;;  %p2189_p10 = scmp.lt.u32.totalorder %s2182_s6, %s2843_s3 }
  0x3a   : > { %p2185_p1 = pnand %p2183_p2, %p2156_p13 }
  0x3c   : > { %p2186_p6 = pneg %p2185_p1 }
  0x3e   : > { %p2191_p3 = pnand %p2189_p10, %p2186_p6 }
  0x40   : > { %2194 = shalt.err (!%p2191_p3)
}
  0x41   : > { %s2195_s27 = scalar_lea.vmem %s2470_s30, 4096  ;;  %p2203_p12 = scmp.lt.s32.totalorder %s2470_s30, %s2470_s30 }
  0x42   : > { %p2196_p5 = scmp.ne.s32.totalorder %s2470_s30, %s2195_s27  ;;  %p2204_p0 = scmp.lt.s32.totalorder %s2195_s27, %s2195_s27 }
  0x44   : > { %p2198_p7 = pnand %p2196_p5, %p2156_p13  ;;  %p2205_p2 = por %p2204_p0, %p2203_p12 }
  0x46   : > { %p2199_p9 = pneg %p2198_p7 }
  0x48   : > { %p2206_p1 = pnand %p2205_p2, %p2199_p9 }
  0x4a   : > { %2209 = shalt.err (!%p2206_p1)
}
  0x4b   : > { %s2370_s11 = smov 64   ;;  %s2371_s12 = smov 4  }
  0x4c   : > { %1997 = dma.hbm_to_vmem [thread:$0]  (!%p2466_p11), %s2843_s3, 4096, %s2470_s30, [#allocation11], %s2370_s11, %s2370_s11, %s2371_s12  }
  0x4d   : > { %s36_s22 = sadd.s32 1, %s2360_s19  ;;  %s45_s26 = sadd.s32 1, %s2352_s17 }
  0x4e   : > { %p38_p13 = scmp.ge.s32.totalorder %s36_s22, 2  ;;  %p52_p6 = scmp.ne.s32.totalorder %s2352_s17, %s2348_s16 }
  0x4f   : > { %p53_p10 = scmp.eq.s32.totalorder %s2364_s20, 0  ;;  %p2011_p3 = scmp.lt.s32.totalorder %s2364_s20, 2 }
  0x50   : > { %s2864_s22 = smov (%p38_p13, %s36_s22), 0  ;;  %p2845_p7 = scmp.eq.s32.totalorder %s2436_s21, 1 }
  0x51   : > { %2844 = sst [smem:[#allocation18_spill]] %s2864_s22  ;;  %p54_p5 = por %p53_p10, %p52_p6 }
  0x52   : > { %p2534_p9 = por %p2845_p7, %p52_p6  ;;  %s40_s28 = ssub.s32 %s2360_s19, %s2864_s22 }
  0x53   : > { %s2541_s5 = sand.u32 1, %s2352_s17   ;;  %p43_p11 = scmp.eq.s32.totalorder %s40_s28, 0 }
  0x54   : > { %s2846_s29 = scalar_select %p2534_p9, 1, 0 }
  0x55   : > { %s1677_s30 = sshll.u32 %s2541_s5, 8  ;;  %s1798_s6 = sshll.u32 %s2360_s19, 12 }
  0x56   : > { %s2546_s7 = scalar_select %p43_p11, %s2352_s17, %s45_s26  }
  0x57   : > { %s2847_s0 = sld [smem:[#allocation19_spill]]  ;;  %s208_s27 = scalar_lea.vmem [#allocation4], %s1677_s30 }
  0x58   : > { %s217_s11 = sshll.u32 %s208_s27, 4  ;;  %p2555_p12 = pnand %p2011_p3, %p54_p5  ;;  %s2559_s11 = int_to_ptr.vmem [resolvable:$true] %s217_s11 }
  0x59   : > { %s205_s13 = scalar_lea.sflag [#allocation5], %s2541_s5 }
  0x5a   : > { %p2212_p2 = pneg %p2555_p12 }
  0x5d   : > { %s2551_s10 = scalar_lea.hbm %s2847_s0, %s1798_s6  ;;  %s2215_s30 = scalar_lea.hbm %s2847_s0, 8192 }
  0x5e   : > { %s2210_s14 = scalar_lea.hbm %s2551_s10, 4096  ;;  %p2216_p6 = scmp.lt.u32.totalorder %s2551_s10, %s2847_s0 }
  0x5f   : > { %p2211_p0 = scmp.ne.s32.totalorder %s2551_s10, %s2210_s14  ;;  %p2217_p10 = scmp.lt.u32.totalorder %s2215_s30, %s2210_s14 }
  0x60   : > { %p2219_p5 = scmp.lt.u32.totalorder %s2210_s14, %s2551_s10 }
  0x61   : > { %p2213_p1 = pnand %p2212_p2, %p2211_p0  ;;  %p2218_p3 = por %p2217_p10, %p2216_p6 }
  0x63   : > { %p2214_p13 = pneg %p2213_p1  ;;  %p2220_p7 = por %p2219_p5, %p2218_p3 }
  0x65   : > { %p2221_p11 = pnand %p2220_p7, %p2214_p13 }
  0x67   : > { %2224 = shalt.err (!%p2221_p11)
}
  0x68   : > { %s2225_s9 = scalar_lea.vmem %s2559_s11, 4096  ;;  %s2372_s27 = smov [#allocation4]  }
  0x69   : > { %p2226_p0 = scmp.ne.s32.totalorder %s2559_s11, %s2225_s9  ;;  %s2230_s26 = sshll.u32 %s2372_s27, 4  ;;  %s2231_s26 = int_to_ptr.vmem [resolvable:$false] %s2230_s26 }
  0x6a   : > { %s2232_s28 = scalar_lea.vmem %s2231_s26, 8192  ;;  %p2233_p4 = scmp.lt.s32.totalorder %s2559_s11, %s2231_s26 }
  0x6b   : > { %p2228_p1 = pnand %p2226_p0, %p2212_p2  ;;  %p2234_p6 = scmp.lt.s32.totalorder %s2232_s28, %s2225_s9 }
  0x6d   : > { %p2229_p9 = pneg %p2228_p1  ;;  %p2235_p10 = por %p2234_p6, %p2233_p4 }
  0x6f   : > { %p2236_p3 = pnand %p2235_p10, %p2229_p9 }
  0x71   : > { %2239 = shalt.err (!%p2236_p3)
}
  0x72   : > { %s2373_s14 = smov 128   ;;  %s2374_s30 = smov 8  }
  0x73   : > { %2001 = dma.hbm_to_vmem [thread:$0]  (!%p2555_p12), %s2551_s10, 4096, %s2559_s11, %s205_s13, %s2373_s14, %s2373_s14, %s2374_s30  }
  0x74   : > { %s227_s6 = sand.u32 1, %s2364_s20   ;;  %s1680_s8 = sshll.u32 %s2541_s5, 6 }
  0x75   : > { %s1799_s9 = sshll.u32 %s2360_s19, 10  ;;  %s231_s27 = scalar_lea.vmem [#allocation7], %s1680_s8 }
  0x76   : > { %s238_s26 = sshll.u32 %s231_s27, 4  ;;  %s2598_s2 = scalar_lea.hbm %s2827_s1, %s1799_s9  ;;  %s2600_s26 = int_to_ptr.vmem [resolvable:$true] %s238_s26 }
  0x77   : > { %s2602_s3 = scalar_lea.sflag [#allocation8], %s227_s6  ;;  %s2240_s22 = scalar_lea.hbm %s2598_s2, 1024 }
  0x78   : > { %p2241_p4 = scmp.ne.s32.totalorder %s2598_s2, %s2240_s22  ;;  %s2245_s0 = scalar_lea.hbm %s2827_s1, 2048 }
  0x79   : > { %p2246_p5 = scmp.lt.u32.totalorder %s2598_s2, %s2827_s1  ;;  %p2247_p7 = scmp.lt.u32.totalorder %s2245_s0, %s2240_s22 }
  0x7a   : > { %p2243_p9 = pnand %p2241_p4, %p2212_p2  ;;  %p2249_p0 = scmp.lt.u32.totalorder %s2240_s22, %s2598_s2 }
  0x7b   : > { %p2248_p11 = por %p2247_p7, %p2246_p5 }
  0x7c   : > { %p2244_p13 = pneg %p2243_p9 }
  0x7d   : > { %p2250_p1 = por %p2249_p0, %p2248_p11 }
  0x7f   : > { %p2251_p6 = pnand %p2250_p1, %p2244_p13 }
  0x81   : > { %2254 = shalt.err (!%p2251_p6)
}
  0x82   : > { %s2255_s6 = scalar_lea.vmem %s2600_s26, 1024  ;;  %s2375_s8 = smov [#allocation7]  }
  0x83   : > { %p2256_p10 = scmp.ne.s32.totalorder %s2600_s26, %s2255_s6  ;;  %s2260_s9 = sshll.u32 %s2375_s8, 4  ;;  %s2261_s9 = int_to_ptr.vmem [resolvable:$false] %s2260_s9 }
  0x84   : > { %s2262_s27 = scalar_lea.vmem %s2261_s9, 2048  ;;  %p2263_p9 = scmp.lt.s32.totalorder %s2600_s26, %s2261_s9 }
  0x85   : > { %p2258_p3 = pnand %p2256_p10, %p2212_p2  ;;  %p2264_p5 = scmp.lt.s32.totalorder %s2262_s27, %s2255_s6 }
  0x87   : > { %p2259_p4 = pneg %p2258_p3  ;;  %p2265_p7 = por %p2264_p5, %p2263_p9 }
  0x89   : > { %p2266_p11 = pnand %p2265_p7, %p2259_p4 }
  0x8b   : > { %2269 = shalt.err (!%p2266_p11)
}
  0x8c   : > { %2004 = dma.hbm_to_vmem [thread:$0]  (!%p2555_p12), %s2598_s2, 1024, %s2600_s26, %s2602_s3, %s2373_s14, %s2373_s14, %s2374_s30  }
  0x8d   : > { %250 = sbr.rel (%p2455_p8) target bundleno = 931 (0x3a3), region = 36  ;;  %s2634_s22 = sand.u32 (!%p2455_p8), 1, %s2348_s16  }
  0x8e   : > { %s1684_s28 = sshll.u32 (!%p2455_p8), %s2634_s22, 8  ;;  %s253_s5 = scalar_lea.sflag (!%p2455_p8), [#allocation5], %s2634_s22 }
  0x8f   : > { %s2638_s10 = scalar_lea.vmem (!%p2455_p8), [#allocation4], %s1684_s28  ;;  %p2849_p2 = scmp.ne.s32.totalorder (!%p2455_p8), %s2838_s23, 0 }
  0x94   : > { %2323 = dma.done.wait (%p2849_p2), %s253_s5, 4096  }
  0x95   : > { %2325 = vsyncadd (%p2849_p2), %s253_s5, 4294963200  ;;  %s261_s2 = sand.u32 1, %s2436_s21   ;;  %s1685_s3 = sshll.u32 %s2634_s22, 6 }
  0x96   : > { %s262_s25 = scalar_lea.sflag [#allocation8], %s261_s2  ;;  %s2648_s12 = scalar_lea.vmem [#allocation7], %s1685_s3 }
  0x97   : > { %2327 = dma.done.wait (%p2849_p2), %s262_s25, 1024  }
  0x98   : > { %2329 = vsyncadd (%p2849_p2), %s262_s25, 4294966272  ;;  %p2850_p8 = scmp.eq.s32.totalorder %s2436_s21, 0 }
  0x9a   : > { %2331 = dma.done.wait (%p2850_p8), [#allocation8], 4096   ;;  %p2851_p12 = pmov %p2850_p8 }
  0x9b   : > { %p2852_p13 = pmov %p2850_p8 }
  0x9c   : > { %2333 = vsyncadd (%p2851_p12), [#allocation8], 4294963200 }
  0x9d   : > { %2335 = dma.done.wait (%p2852_p13), [#allocation11], 4096   ;;  %p2853_p0 = pmov %p2850_p8 }
  0x9e   : > { %v2376_v0 = vmov 0   ;;  %v2074_v1 = vld [vmem:[#allocation9 + $0x4] ss:$16 sps:$4 sm:$0xff]   ;;  %v2076_v2 = vld [vmem:[#allocation9] ss:$16 sps:$4 sm:$0xff]   ;;  %v2668_v30 = vld [vmem:[%s2648_s12 + $0x8] sm:$0xff] }
  0x9f   : > { %2337 = vsyncadd (%p2853_p0), [#allocation11], 4294963200  ;;  %546 = vmatprep.mubr.bf16.mxu0 %v2376_v0  ;;  %619 = vmatprep.mubr.bf16.mxu1 %v2376_v0  ;;  %v2077_v3 = vld [vmem:[#allocation9 + $0x24] ss:$16 sps:$4 sm:$0xff]   ;;  %v2079_v4 = vld [vmem:[#allocation9 + $0x20] ss:$16 sps:$4 sm:$0xff]  }
  0xa0   : > { %514 = vmatprep.subr.bf16.mxu0 %v2074_v1  ;;  %v2080_v5 = vld [vmem:[#allocation9 + $0x44] ss:$16 sps:$4 sm:$0xff]   ;;  %v2082_v6 = vld [vmem:[#allocation9 + $0x40] ss:$16 sps:$4 sm:$0xff]   ;;  %v2088_v7 = vld [vmem:[#allocation9 + $0xc] ss:$16 sps:$4 sm:$0xff]  }
  0xa1   : > { %515 = vmatpush1.bf16.msra.mxu0 %v2076_v2  ;;  %v2091_v8 = vld [vmem:[#allocation9 + $0x8] ss:$16 sps:$4 sm:$0xff]   ;;  %v2083_v9 = vld [vmem:[#allocation9 + $0x64] ss:$16 sps:$4 sm:$0xff]   ;;  %587 = vmatprep.subr.bf16.mxu1 %v2088_v7  ;;  %v2094_v10 = vld [vmem:[#allocation9 + $0x2c] ss:$16 sps:$4 sm:$0xff]  }
  0xa2   : > { %516 = vmatprep.subr.bf16.mxu0 %v2077_v3  ;;  %588 = vmatpush1.bf16.msra.mxu1 %v2091_v8  ;;  %v2097_v11 = vld [vmem:[#allocation9 + $0x28] ss:$16 sps:$4 sm:$0xff]   ;;  %v2085_v12 = vld [vmem:[#allocation9 + $0x60] ss:$16 sps:$4 sm:$0xff]   ;;  %v2086_v13 = vld [vmem:[#allocation9 + $0x84] ss:$16 sps:$4 sm:$0xff]  }
  0xa3   : > { %589 = vmatprep.subr.bf16.mxu1 %v2094_v10  ;;  %v2100_v14 = vld [vmem:[#allocation9 + $0x4c] ss:$16 sps:$4 sm:$0xff]   ;;  %v2103_v15 = vld [vmem:[#allocation9 + $0x48] ss:$16 sps:$4 sm:$0xff]   ;;  %v2090_v16 = vld [vmem:[#allocation9 + $0x80] ss:$16 sps:$4 sm:$0xff]  }
  0xa4   : > { %v2106_v17 = vld [vmem:[#allocation9 + $0x6c] ss:$16 sps:$4 sm:$0xff]   ;;  %v2092_v18 = vld [vmem:[#allocation9 + $0xa4] ss:$16 sps:$4 sm:$0xff]   ;;  %v2109_v19 = vld [vmem:[#allocation9 + $0x68] ss:$16 sps:$4 sm:$0xff]  }
  0xa5   : > { %517 = vmatpush1.bf16.msra.mxu0 %v2079_v4  ;;  %v2096_v20 = vld [vmem:[#allocation9 + $0xa0] ss:$16 sps:$4 sm:$0xff]   ;;  %v2110_v21 = vld [vmem:[#allocation9 + $0x8c] ss:$16 sps:$4 sm:$0xff]   ;;  %v2098_v22 = vld [vmem:[#allocation9 + $0xc4] ss:$16 sps:$4 sm:$0xff]  }
  0xa6   : > { %518 = vmatprep.subr.bf16.mxu0 %v2080_v5  ;;  %590 = vmatpush1.bf16.msra.mxu1 %v2097_v11  ;;  %v2112_v23 = vld [vmem:[#allocation9 + $0x88] ss:$16 sps:$4 sm:$0xff]   ;;  %v2102_v24 = vld [vmem:[#allocation9 + $0xc0] ss:$16 sps:$4 sm:$0xff]   ;;  %v2104_v25 = vld [vmem:[#allocation9 + $0xe4] ss:$16 sps:$4 sm:$0xff]  }
  0xa7   : > { %591 = vmatprep.subr.bf16.mxu1 %v2100_v14  ;;  %v2113_v26 = vld [vmem:[#allocation9 + $0xac] ss:$16 sps:$4 sm:$0xff]   ;;  %v2115_v27 = vld [vmem:[#allocation9 + $0xa8] ss:$16 sps:$4 sm:$0xff]   ;;  %v2108_v28 = vld [vmem:[#allocation9 + $0xe0] ss:$16 sps:$4 sm:$0xff]  }
  0xa8   : > { %v2665_v29 = vld [vmem:[%s2648_s12] sm:$0xff]  ;;  %v2116_v31 = vld [vmem:[#allocation9 + $0xcc] ss:$16 sps:$4 sm:$0xff]   ;;  %v2118_v32 = vld [vmem:[#allocation9 + $0xc8] ss:$16 sps:$4 sm:$0xff]   ;;  %vm708_vm0 = vcmask 523264  }
  0xa9   : > { %519 = vmatpush1.bf16.msra.mxu0 %v2082_v6  ;;  %v2119_v33 = vld [vmem:[#allocation9 + $0xec] ss:$16 sps:$4 sm:$0xff]   ;;  %v318_v34 = vpack.c.bf16 %v2668_v30, %v2665_v29  ;;  %v2121_v35 = vld [vmem:[#allocation9 + $0xe8] ss:$16 sps:$4 sm:$0xff]   ;;  %v2673_v36 = vld [vmem:[%s2648_s12 + $0x10] sm:$0xff]  ;;  %s2753_s21 = scalar_lea.vmem [#allocation12], %s1685_s3 }
  0xaa   : > { %520 = vmatprep.subr.bf16.mxu0 %v2083_v9  ;;  %592 = vmatpush1.bf16.msra.mxu1 %v2103_v15  ;;  %v2676_v37 = vld [vmem:[%s2648_s12 + $0x18] sm:$0xff]  ;;  %v2682_v39 = vld [vmem:[%s2648_s12 + $0x20] sm:$0xff]  ;;  %v2685_v40 = vld [vmem:[%s2648_s12 + $0x28] sm:$0xff]  ;;  %s1800_s23 = sshll.u32 %s2356_s18, 10  ;;  %s1542_s14 = sshll.u32 %s2753_s21, 4  ;;  %s2774_s14 = int_to_ptr.vmem [resolvable:$true] %s1542_s14 }
  0xab   : > { %593 = vmatprep.subr.bf16.mxu1 %v2106_v17  ;;  %v319_v38 = vpack.c.bf16 %v2676_v37, %v2673_v36  ;;  %v320_v41 = vpack.c.bf16 %v2685_v40, %v2682_v39  ;;  %v2694_v42 = vld [vmem:[%s2648_s12 + $0x30] sm:$0xff]  ;;  %v2697_v43 = vld [vmem:[%s2648_s12 + $0x38] sm:$0xff]  ;;  %v692_v45 = vld [vmem:[%s2638_s10] sm:$0xff]  ;;  %s2772_s0 = scalar_lea.hbm %s2830_s4, %s1800_s23  ;;  %s1527_s11 = scalar_lea.sflag [#allocation6], %s2634_s22 }
  0xac   : > { %v321_v44 = vpack.c.bf16 %v2697_v43, %v2694_v42  ;;  %v693_v46 = vld [vmem:[%s2638_s10 + $0x8] sm:$0xff]  ;;  %v1725_v48 = vld [vmem:[%s2638_s10 + $0x40] sm:$0xff]  ;;  %s2270_s18 = scalar_lea.vmem %s2774_s14, 1024  ;;  %p2854_p6 = scmp.ne.s32.totalorder %s2846_s29, 0 }
  0xad   : > { %521 = vmatpush1.bf16.msra.mxu0 %v2085_v12  ;;  %v700_v47 = vpack.c.bf16 %v693_v46, %v692_v45  ;;  %v1726_v49 = vld [vmem:[%s2638_s10 + $0x48] sm:$0xff]  ;;  %v696_v45 = vld [vmem:[%s2638_s10 + $0x20] sm:$0xff]  ;;  %p2271_p1 = scmp.ne.s32.totalorder %s2774_s14, %s2270_s18  ;;  %s2377_s13 = smov [#allocation12]  }
  0xae   : > { %522 = vmatprep.subr.bf16.mxu0 %v2086_v13  ;;  %594 = vmatpush1.bf16.msra.mxu1 %v2109_v19  ;;  %v803_v50 = vpack.c.bf16 %v1726_v49, %v1725_v48  ;;  %v697_v46 = vld [vmem:[%s2638_s10 + $0x28] sm:$0xff]  ;;  %s2274_s6 = sshll.u32 %s2377_s13, 4  ;;  %s2275_s6 = int_to_ptr.vmem [resolvable:$false] %s2274_s6 }
  0xaf   : > { %595 = vmatprep.subr.bf16.mxu1 %v2110_v21  ;;  %p2272_p10 = pnand %p2271_p1, %p2854_p6  ;;  %s2276_s8 = scalar_lea.vmem %s2275_s6, 2048 }
  0xb0   : > { %p2277_p4 = scmp.lt.s32.totalorder %s2774_s14, %s2275_s6  ;;  %p2278_p9 = scmp.lt.s32.totalorder %s2276_s8, %s2270_s18 }
  0xb1   : > { %523 = vmatpush1.bf16.msra.mxu0 %v2090_v16  ;;  %p2273_p3 = pneg %p2272_p10 }
  0xb2   : > { %524 = vmatprep.subr.bf16.mxu0 %v2092_v18  ;;  %596 = vmatpush1.bf16.msra.mxu1 %v2112_v23  ;;  %v694_v23 = vld [vmem:[%s2638_s10 + $0x10] sm:$0xff]  ;;  %p2279_p5 = por %p2278_p9, %p2277_p4 }
  0xb3   : > { %597 = vmatprep.subr.bf16.mxu1 %v2113_v26 }
  0xb4   : > { %p2280_p7 = pnand %p2279_p5, %p2273_p3 }
  0xb5   : > { %525 = vmatpush1.bf16.msra.mxu0 %v2096_v20 }
  0xb6   : > { %526 = vmatprep.subr.bf16.mxu0 %v2098_v22  ;;  %598 = vmatpush1.bf16.msra.mxu1 %v2115_v27 }
  0xb7   : > { %599 = vmatprep.subr.bf16.mxu1 %v2116_v31  ;;  %v1727_v31 = vld [vmem:[%s2638_s10 + $0x50] sm:$0xff] }
  0xb9   : > { %527 = vmatpush1.bf16.msra.mxu0 %v2102_v24  ;;  %v695_v24 = vld [vmem:[%s2638_s10 + $0x18] sm:$0xff] }
  0xba   : > { %528 = vmatprep.subr.bf16.mxu0 %v2104_v25  ;;  %600 = vmatpush1.bf16.msra.mxu1 %v2118_v32  ;;  %v1728_v32 = vld [vmem:[%s2638_s10 + $0x58] sm:$0xff] }
  0xbb   : > { %601 = vmatprep.subr.bf16.mxu1 %v2119_v33 }
  0xbd   : > { %529 = vmatpush1.bf16.msra.mxu0 %v2108_v28 }
  0xbe   : > { %602 = vmatpush1.bf16.msra.mxu1 %v2121_v35  ;;  %v701_v35 = vpack.c.bf16 %v695_v24, %v694_v23  ;;  %v1755_v23 = vld [vmem:[%s2638_s10 + $0xf0] sm:$0xff]  ;;  %v1756_v24 = vld [vmem:[%s2638_s10 + $0xf8] sm:$0xff] }
  0xc0   : > { %547 = vmatmul.mubr.bf16.vlgmr.msra.gmra.mrb[0].mxu0 %v318_v34 }
  0xc1   : > { %556 = vmatprep.mubr.bf16.mxu0 %v2376_v0  ;;  %620 = vmatmul.mubr.bf16.vlgmr.msra.gmra.mrb[0].mxu1 %v318_v34 }
  0xc2   : > { %629 = vmatprep.mubr.bf16.mxu1 %v2376_v0 }
  0xc8   : > { %557 = vmatmul.mubr.bf16.gmra.mrb[4].mxu0 %v319_v38 }
  0xc9   : > { %566 = vmatprep.mubr.bf16.mxu0 %v2376_v0  ;;  %630 = vmatmul.mubr.bf16.gmra.mrb[4].mxu1 %v319_v38  ;;  %v1729_v38 = vld [vmem:[%s2638_s10 + $0x60] sm:$0xff] }
  0xca   : > { %639 = vmatprep.mubr.bf16.mxu1 %v2376_v0 }
  0xd0   : > { %567 = vmatmul.mubr.bf16.gmra.mrb[8].mxu0 %v320_v41 }
  0xd1   : > { %576 = vmatprep.mubr.bf16.mxu0 %v2376_v0  ;;  %640 = vmatmul.mubr.bf16.gmra.mrb[8].mxu1 %v320_v41  ;;  %v1730_v41 = vld [vmem:[%s2638_s10 + $0x68] sm:$0xff] }
  0xd2   : > { %649 = vmatprep.mubr.bf16.mxu1 %v2376_v0  ;;  %v805_v49 = vpack.c.bf16 %v1730_v41, %v1729_v38  ;;  %v2130_v38 = vld [vmem:[#allocation10 + $0x60] sm:$0xff]  }
  0xd3   : > { %v2132_v41 = vld [vmem:[#allocation10 + $0x20] sm:$0xff]  }
  0xd8   : > { %577 = vmatmul.mubr.bf16.gmra.mrb[12].mxu0 %v321_v44 }
  0xd9   : > { %650 = vmatmul.mubr.bf16.gmra.mrb[12].mxu1 %v321_v44  ;;  %1921 = vmatprep.mubr.msk.bf16.mxu0 %vm708_vm0, %v700_v47  ;;  %v804_v44 = vpack.c.bf16 %v1728_v32, %v1727_v31  ;;  %v2139_v31 = vld [vmem:[#allocation10 + $0xd0] sm:$0xff]   ;;  %v1010_v32 = vpack.c.bf16 %v1756_v24, %v1755_v23 }
  0xda   : > { %1937 = vmatprep.mubr.msk.bf16.mxu1 %vm708_vm0, %v803_v50 }
 0x193   : > { %v548_v51 = vpop.f32.mrb[0].mxu0 }
 0x194   : > { %v550_v52 = vpop.f32.mrb[1].mxu0  ;;  %v621_v57 = vpop.f32.mrb[0].mxu1 }
 0x195   : > { %v552_v53 = vpop.f32.mrb[2].mxu0  ;;  %v623_v59 = vpop.f32.mrb[1].mxu1 }
 0x196   : > { %v660_v54 = vpack.c.bf16 %v552_v53, %v548_v51  ;;  %v554_v55 = vpop.f32.mrb[3].mxu0  ;;  %v625_v61 = vpop.f32.mrb[2].mxu1  ;;  %v702_v51 = vpack.c.bf16 %v697_v46, %v696_v45  ;;  %v2136_v45 = vld [vmem:[#allocation10 + $0x28] sm:$0xff]   ;;  %v2138_v46 = vld [vmem:[#allocation10 + $0x70] sm:$0xff]  }
 0x197   : > { %v661_v56 = vpack.c.bf16 %v554_v55, %v550_v52  ;;  %v662_v63 = vpack.c.bf16 %v625_v61, %v621_v57  ;;  %v627_v0 = vpop.f32.mrb[3].mxu1  ;;  %v699_v55 = vld [vmem:[%s2638_s10 + $0x38] sm:$0xff]  ;;  %v1750_v61 = vld [vmem:[%s2638_s10 + $0xc8] sm:$0xff] }
 0x198   : > { %1913 = vmatprep.subr.bf16.mxu0 %v660_v54  ;;  %v663_v3 = vpack.c.bf16 %v627_v0, %v623_v59  ;;  %v1732_v57 = vld [vmem:[%s2638_s10 + $0x78] sm:$0xff]  ;;  %v1738_v0 = vld [vmem:[%s2638_s10 + $0x88] sm:$0xff] }
 0x199   : > { %1914 = vmatpush3.bf16.msra.mxu0 %v660_v54  ;;  %1929 = vmatprep.subr.bf16.mxu1 %v661_v56  ;;  %v698_v54 = vld [vmem:[%s2638_s10 + $0x30] sm:$0xff] }
 0x19a   : > { %1930 = vmatpush3.bf16.msra.mxu1 %v661_v56  ;;  %v1731_v56 = vld [vmem:[%s2638_s10 + $0x70] sm:$0xff]  ;;  %v703_v59 = vpack.c.bf16 %v699_v55, %v698_v54  ;;  %v2147_v54 = vld [vmem:[#allocation10 + $0xa0] sm:$0xff]   ;;  %v2148_v55 = vld [vmem:[#allocation10 + $0xe8] sm:$0xff]  }
 0x19b   : > { %v558_v58 = vpop.f32.mrb[4].mxu0 }
 0x19c   : > { %v560_v60 = vpop.f32.mrb[5].mxu0  ;;  %v631_v5 = vpop.f32.mrb[4].mxu1 }
 0x19d   : > { %v562_v62 = vpop.f32.mrb[6].mxu0  ;;  %v633_v7 = vpop.f32.mrb[5].mxu1 }
 0x19e   : > { %v664_v1 = vpack.c.bf16 %v562_v62, %v558_v58  ;;  %v564_v2 = vpop.f32.mrb[7].mxu0  ;;  %v635_v9 = vpop.f32.mrb[6].mxu1  ;;  %v806_v62 = vpack.c.bf16 %v1732_v57, %v1731_v56  ;;  %v2149_v56 = vld [vmem:[#allocation10 + $0xa8] sm:$0xff]   ;;  %v2150_v57 = vld [vmem:[#allocation10 + $0xf0] sm:$0xff]  }
 0x19f   : > { %v665_v4 = vpack.c.bf16 %v564_v2, %v560_v60  ;;  %v666_v11 = vpack.c.bf16 %v635_v9, %v631_v5  ;;  %v637_v12 = vpop.f32.mrb[7].mxu1  ;;  %v1749_v60 = vld [vmem:[%s2638_s10 + $0xc0] sm:$0xff]  ;;  %v1752_v5 = vld [vmem:[%s2638_s10 + $0xd8] sm:$0xff] }
 0x1a0   : > { %1915 = vmatprep.subr.bf16.mxu0 %v664_v1  ;;  %v667_v15 = vpack.c.bf16 %v637_v12, %v633_v7  ;;  %v1741_v7 = vld [vmem:[%s2638_s10 + $0xa0] sm:$0xff] }
 0x1a1   : > { %1916 = vmatpush3.bf16.msra.mxu0 %v664_v1  ;;  %1931 = vmatprep.subr.bf16.mxu1 %v665_v4  ;;  %v1007_v1 = vpack.c.bf16 %v1750_v61, %v1749_v60  ;;  %v2122_v9 = vld [vmem:[#allocation10 + $0x40] sm:$0xff]   ;;  %v2153_v60 = vld [vmem:[#allocation10 + $0xb8] sm:$0xff]  }
 0x1a2   : > { %1932 = vmatpush3.bf16.msra.mxu1 %v665_v4  ;;  %v1751_v4 = vld [vmem:[%s2638_s10 + $0xd0] sm:$0xff]  ;;  %v2131_v12 = vld [vmem:[#allocation10 + $0xc0] sm:$0xff]  }
 0x1a3   : > { %v568_v6 = vpop.f32.mrb[8].mxu0 }
 0x1a4   : > { %v570_v8 = vpop.f32.mrb[9].mxu0  ;;  %v641_v17 = vpop.f32.mrb[8].mxu1 }
 0x1a5   : > { %v572_v10 = vpop.f32.mrb[10].mxu0  ;;  %v643_v19 = vpop.f32.mrb[9].mxu1 }
 0x1a6   : > { %v668_v13 = vpack.c.bf16 %v572_v10, %v568_v6  ;;  %v574_v14 = vpop.f32.mrb[11].mxu0  ;;  %v645_v21 = vpop.f32.mrb[10].mxu1  ;;  %v1740_v6 = vld [vmem:[%s2638_s10 + $0x98] sm:$0xff]  ;;  %v1753_v10 = vld [vmem:[%s2638_s10 + $0xe0] sm:$0xff] }
 0x1a7   : > { %v669_v16 = vpack.c.bf16 %v574_v14, %v570_v8  ;;  %v670_v25 = vpack.c.bf16 %v645_v21, %v641_v17  ;;  %v647_v26 = vpop.f32.mrb[11].mxu1  ;;  %v1742_v8 = vld [vmem:[%s2638_s10 + $0xa8] sm:$0xff]  ;;  %v1008_v14 = vpack.c.bf16 %v1752_v5, %v1751_v4  ;;  %v2123_v17 = vld [vmem:[#allocation10] sm:$0xff]   ;;  %v1743_v21 = vld [vmem:[%s2638_s10 + $0xb0] sm:$0xff] }
 0x1a8   : > { %1917 = vmatprep.subr.bf16.mxu0 %v668_v13  ;;  %v671_v33 = vpack.c.bf16 %v647_v26, %v643_v19  ;;  %v2133_v19 = vld [vmem:[#allocation10 + $0x80] sm:$0xff]   ;;  %v2126_v26 = vld [vmem:[#allocation10 + $0x50] sm:$0xff]  }
 0x1a9   : > { %1918 = vmatpush3.bf16.msra.mxu0 %v668_v13  ;;  %1933 = vmatprep.subr.bf16.mxu1 %v669_v16 }
 0x1aa   : > { %1934 = vmatpush3.bf16.msra.mxu1 %v669_v16 }
 0x1ab   : > { %v578_v18 = vpop.f32.mrb[12].mxu0 }
 0x1ac   : > { %v580_v20 = vpop.f32.mrb[13].mxu0  ;;  %v651_v47 = vpop.f32.mrb[12].mxu1 }
 0x1ad   : > { %v582_v22 = vpop.f32.mrb[14].mxu0  ;;  %v653_v48 = vpop.f32.mrb[13].mxu1 }
 0x1ae   : > { %v672_v27 = vpack.c.bf16 %v582_v22, %v578_v18  ;;  %v584_v28 = vpop.f32.mrb[15].mxu0  ;;  %v655_v50 = vpop.f32.mrb[14].mxu1  ;;  %v2124_v18 = vld [vmem:[#allocation10 + $0x48] sm:$0xff]   ;;  %v1744_v22 = vld [vmem:[%s2638_s10 + $0xb8] sm:$0xff] }
 0x1af   : > { %v673_v34 = vpack.c.bf16 %v584_v28, %v580_v20  ;;  %v674_v52 = vpack.c.bf16 %v655_v50, %v651_v47  ;;  %v657_v53 = vpop.f32.mrb[15].mxu1  ;;  %v2135_v20 = vld [vmem:[#allocation10 + $0xc8] sm:$0xff]   ;;  %v908_v28 = vpack.c.bf16 %v1744_v22, %v1743_v21  ;;  %v2140_v47 = vld [vmem:[#allocation10 + $0x30] sm:$0xff]   ;;  %v2143_v50 = vld [vmem:[#allocation10 + $0xd8] sm:$0xff]  }
 0x1b0   : > { %1919 = vmatprep.subr.bf16.mxu0 %v672_v27  ;;  %v675_v58 = vpack.c.bf16 %v657_v53, %v653_v48  ;;  %v2141_v48 = vld [vmem:[#allocation10 + $0x90] sm:$0xff]   ;;  %v2146_v53 = vld [vmem:[#allocation10 + $0xe0] sm:$0xff]  }
 0x1b1   : > { %1920 = vmatpush3.bf16.msra.mxu0 %v672_v27  ;;  %1935 = vmatprep.subr.bf16.mxu1 %v673_v34  ;;  %v2137_v27 = vld [vmem:[#allocation10 + $0x88] sm:$0xff]  }
 0x1b2   : > { %1936 = vmatpush3.bf16.msra.mxu1 %v673_v34  ;;  %1945 = vmatprep.subr.bf16.mxu0 %v662_v63  ;;  %v2128_v34 = vld [vmem:[#allocation10 + $0x58] sm:$0xff]  }
 0x1b3   : > { %1961 = vmatprep.subr.bf16.mxu1 %v663_v3 }
 0x1b4   : > { %1922 = vmatmul.mubr.msk.bf16.vlgmr.msra.gmra.mrb[16].mxu0 %vm708_vm0, %v701_v35  ;;  %v2129_v35 = vld [vmem:[#allocation10 + $0x18] sm:$0xff]  }
 0x1b5   : > { %1938 = vmatmul.mubr.msk.bf16.vlgmr.msra.gmra.mrb[16].mxu1 %vm708_vm0, %v804_v44  ;;  %1946 = vmatpush3.bf16.msra.mxu0 %v662_v63  ;;  %v1737_v63 = vld [vmem:[%s2638_s10 + $0x80] sm:$0xff]  ;;  %v2134_v44 = vld [vmem:[#allocation10 + $0x68] sm:$0xff]  }
 0x1b6   : > { %1947 = vmatprep.subr.bf16.mxu0 %v666_v11  ;;  %1962 = vmatpush3.bf16.msra.mxu1 %v663_v3  ;;  %v905_v2 = vpack.c.bf16 %v1738_v0, %v1737_v63  ;;  %v1739_v3 = vld [vmem:[%s2638_s10 + $0x90] sm:$0xff] }
 0x1b7   : > { %1963 = vmatprep.subr.bf16.mxu1 %v667_v15  ;;  %1941 = vmatprep.mubr.msk.bf16.mxu1 %vm708_vm0, %v805_v49  ;;  %v906_v13 = vpack.c.bf16 %v1740_v6, %v1739_v3  ;;  %v2142_v49 = vld [vmem:[#allocation10 + $0x78] sm:$0xff]  }
 0x1b8   : > { %1925 = vmatprep.mubr.msk.bf16.mxu0 %vm708_vm0, %v702_v51  ;;  %v2144_v51 = vld [vmem:[#allocation10 + $0x38] sm:$0xff]  }
 0x1b9   : > { %1948 = vmatpush3.bf16.msra.mxu0 %v666_v11  ;;  %v1754_v11 = vld [vmem:[%s2638_s10 + $0xe8] sm:$0xff] }
 0x1ba   : > { %1949 = vmatprep.subr.bf16.mxu0 %v670_v25  ;;  %1964 = vmatpush3.bf16.msra.mxu1 %v667_v15  ;;  %v907_v15 = vpack.c.bf16 %v1742_v8, %v1741_v7  ;;  %v1009_v16 = vpack.c.bf16 %v1754_v11, %v1753_v10 }
 0x1bb   : > { %1965 = vmatprep.subr.bf16.mxu1 %v671_v33 }
 0x1bc   : > { %1926 = vmatmul.mubr.msk.bf16.gmra.mrb[20].mxu0 %vm708_vm0, %v703_v59  ;;  %v2152_v59 = vld [vmem:[#allocation10 + $0xf8] sm:$0xff]  }
 0x1bd   : > { %1942 = vmatmul.mubr.msk.bf16.gmra.mrb[20].mxu1 %vm708_vm0, %v806_v62  ;;  %1950 = vmatpush3.bf16.msra.mxu0 %v670_v25  ;;  %v2125_v25 = vld [vmem:[#allocation10 + $0x8] sm:$0xff]  }
 0x1be   : > { %1966 = vmatpush3.bf16.msra.mxu1 %v671_v33  ;;  %1951 = vmatprep.subr.bf16.mxu0 %v674_v52  ;;  %v2127_v33 = vld [vmem:[#allocation10 + $0x10] sm:$0xff]  }
 0x1bf   : > { %1967 = vmatprep.subr.bf16.mxu1 %v675_v58  ;;  %1969 = vmatprep.mubr.msk.bf16.mxu1 %vm708_vm0, %v1007_v1 }
 0x1c0   : > { %1953 = vmatprep.mubr.msk.bf16.mxu0 %vm708_vm0, %v905_v2 }
 0x1c1   : > { %1952 = vmatpush3.bf16.msra.mxu0 %v674_v52  ;;  %v2145_v52 = vld [vmem:[#allocation10 + $0x98] sm:$0xff]  }
 0x1c2   : > { %1968 = vmatpush3.bf16.msra.mxu1 %v675_v58  ;;  %1833 = vmatprep.subr.bf16.mxu0 %v2122_v9  ;;  %v2151_v58 = vld [vmem:[#allocation10 + $0xb0] sm:$0xff]  }
 0x1c3   : > { %1873 = vmatprep.subr.bf16.mxu1 %v2131_v12 }
 0x1c4   : > { %1954 = vmatmul.mubr.msk.bf16.vlgmr.msra.gmra.mrb[24].mxu0 %vm708_vm0, %v906_v13 }
 0x1c5   : > { %1970 = vmatmul.mubr.msk.bf16.vlgmr.msra.gmra.mrb[24].mxu1 %vm708_vm0, %v1008_v14  ;;  %1957 = vmatprep.mubr.msk.bf16.mxu0 %vm708_vm0, %v907_v15 }
 0x1c6   : > { %1973 = vmatprep.mubr.msk.bf16.mxu1 %vm708_vm0, %v1009_v16  ;;  %1834 = vmatpush3.bf16.msra.mxu0 %v2123_v17 }
 0x1c7   : > { %1835 = vmatprep.subr.bf16.mxu0 %v2124_v18  ;;  %1874 = vmatpush3.bf16.msra.mxu1 %v2133_v19 }
 0x1c8   : > { %1875 = vmatprep.subr.bf16.mxu1 %v2135_v20 }
 0x1ca   : > { %1836 = vmatpush3.bf16.msra.mxu0 %v2125_v25 }
 0x1cb   : > { %1837 = vmatprep.subr.bf16.mxu0 %v2126_v26  ;;  %1876 = vmatpush3.bf16.msra.mxu1 %v2137_v27 }
 0x1cc   : > { %1958 = vmatmul.mubr.msk.bf16.gmra.mrb[28].mxu0 %vm708_vm0, %v908_v28  ;;  %1877 = vmatprep.subr.bf16.mxu1 %v2139_v31 }
 0x1cd   : > { %1974 = vmatmul.mubr.msk.bf16.gmra.mrb[28].mxu1 %vm708_vm0, %v1010_v32 }
 0x1ce   : > { %1838 = vmatpush3.bf16.msra.mxu0 %v2127_v33 }
 0x1cf   : > { %1839 = vmatprep.subr.bf16.mxu0 %v2128_v34  ;;  %1878 = vmatpush3.bf16.msra.mxu1 %v2141_v48 }
 0x1d0   : > { %1879 = vmatprep.subr.bf16.mxu1 %v2143_v50 }
 0x1d2   : > { %1840 = vmatpush3.bf16.msra.mxu0 %v2129_v35 }
 0x1d3   : > { %1841 = vmatprep.subr.bf16.mxu0 %v2130_v38  ;;  %1880 = vmatpush3.bf16.msra.mxu1 %v2145_v52 }
 0x1d4   : > { %1881 = vmatprep.subr.bf16.mxu1 %v2146_v53 }
 0x1d6   : > { %1842 = vmatpush3.bf16.msra.mxu0 %v2132_v41 }
 0x1d7   : > { %1843 = vmatprep.subr.bf16.mxu0 %v2134_v44  ;;  %1882 = vmatpush3.bf16.msra.mxu1 %v2147_v54 }
 0x1d8   : > { %1883 = vmatprep.subr.bf16.mxu1 %v2148_v55 }
 0x1da   : > { %1844 = vmatpush3.bf16.msra.mxu0 %v2136_v45 }
 0x1db   : > { %1845 = vmatprep.subr.bf16.mxu0 %v2138_v46  ;;  %1884 = vmatpush3.bf16.msra.mxu1 %v2149_v56 }
 0x1dc   : > { %1885 = vmatprep.subr.bf16.mxu1 %v2150_v57 }
 0x1de   : > { %1846 = vmatpush3.bf16.msra.mxu0 %v2140_v47 }
 0x1df   : > { %1847 = vmatprep.subr.bf16.mxu0 %v2142_v49  ;;  %1886 = vmatpush3.bf16.msra.mxu1 %v2151_v58 }
 0x1e0   : > { %1887 = vmatprep.subr.bf16.mxu1 %v2152_v59 }
 0x1e2   : > { %1848 = vmatpush3.bf16.msra.mxu0 %v2144_v51 }
 0x1e3   : > { %1888 = vmatpush3.bf16.msra.mxu1 %v2153_v60 }
 0x287   : > { %v1923_v61 = vpop.f32.mrb[16].mxu0 }
 0x288   : > { %v1939_v62 = vpop.f32.mrb[16].mxu1  ;;  %v755_v63 = vpop.f32.mrb[17].mxu0 }
 0x289   : > { %v857_v0 = vpop.f32.mrb[17].mxu1  ;;  %v1924_v1 = vpop.f32.mrb[18].mxu0 }
 0x28a   : > { %v1940_v2 = vpop.f32.mrb[18].mxu1  ;;  %v787_v3 = vpack.c.bf16 %v1924_v1, %v1923_v61  ;;  %v758_v4 = vpop.f32.mrb[19].mxu0 }
 0x28b   : > { %v889_v5 = vpack.c.bf16 %v1940_v2, %v1939_v62  ;;  %v860_v6 = vpop.f32.mrb[19].mxu1  ;;  %v786_v7 = vpack.c.bf16 %v758_v4, %v755_v63 }
 0x28c   : > { %v888_v8 = vpack.c.bf16 %v860_v6, %v857_v0 }
 0x28e   : > { %1404 = vmatprep.mubr.bf16.mxu0 %v888_v8 }
 0x28f   : > { %1405 = vmatmul.mubr.bf16.vlgmr.msra.gmra.mrb[32].mxu0 %v786_v7  ;;  %v1927_v9 = vpop.f32.mrb[20].mxu0 }
 0x290   : > { %1412 = vmatprep.mubr.bf16.mxu0 %v889_v5  ;;  %v1943_v10 = vpop.f32.mrb[20].mxu1  ;;  %v771_v11 = vpop.f32.mrb[21].mxu0 }
 0x291   : > { %v873_v12 = vpop.f32.mrb[21].mxu1  ;;  %v1928_v13 = vpop.f32.mrb[22].mxu0 }
 0x292   : > { %v1944_v14 = vpop.f32.mrb[22].mxu1  ;;  %v789_v15 = vpack.c.bf16 %v1928_v13, %v1927_v9  ;;  %v774_v16 = vpop.f32.mrb[23].mxu0 }
 0x293   : > { %v891_v17 = vpack.c.bf16 %v1944_v14, %v1943_v10  ;;  %v876_v18 = vpop.f32.mrb[23].mxu1  ;;  %v788_v19 = vpack.c.bf16 %v774_v16, %v771_v11 }
 0x294   : > { %v890_v20 = vpack.c.bf16 %v876_v18, %v873_v12 }
 0x297   : > { %1413 = vmatmul.mubr.bf16.gmra.mrb[36].mxu0 %v787_v3  ;;  %v1955_v21 = vpop.f32.mrb[24].mxu0 }
 0x298   : > { %v1971_v22 = vpop.f32.mrb[24].mxu1  ;;  %1420 = vmatprep.mubr.bf16.mxu0 %v890_v20  ;;  %v959_v23 = vpop.f32.mrb[25].mxu0 }
 0x299   : > { %v1061_v24 = vpop.f32.mrb[25].mxu1  ;;  %v1956_v25 = vpop.f32.mrb[26].mxu0 }
 0x29a   : > { %v1972_v26 = vpop.f32.mrb[26].mxu1  ;;  %v991_v27 = vpack.c.bf16 %v1956_v25, %v1955_v21  ;;  %v962_v28 = vpop.f32.mrb[27].mxu0 }
 0x29b   : > { %v1093_v31 = vpack.c.bf16 %v1972_v26, %v1971_v22  ;;  %v1064_v32 = vpop.f32.mrb[27].mxu1  ;;  %v990_v33 = vpack.c.bf16 %v962_v28, %v959_v23 }
 0x29c   : > { %v1092_v34 = vpack.c.bf16 %v1064_v32, %v1061_v24 }
 0x29e   : > { %1469 = vmatprep.mubr.bf16.mxu1 %v1092_v34 }
 0x29f   : > { %1421 = vmatmul.mubr.bf16.gmra.mrb[40].mxu0 %v788_v19  ;;  %1470 = vmatmul.mubr.bf16.vlgmr.msra.gmra.mrb[32].mxu1 %v990_v33  ;;  %v1959_v35 = vpop.f32.mrb[28].mxu0 }
 0x2a0   : > { %1428 = vmatprep.mubr.bf16.mxu0 %v891_v17  ;;  %1477 = vmatprep.mubr.bf16.mxu1 %v1093_v31  ;;  %v1975_v38 = vpop.f32.mrb[28].mxu1  ;;  %v975_v41 = vpop.f32.mrb[29].mxu0 }
 0x2a1   : > { %v1077_v44 = vpop.f32.mrb[29].mxu1  ;;  %v1960_v45 = vpop.f32.mrb[30].mxu0 }
 0x2a2   : > { %v1976_v46 = vpop.f32.mrb[30].mxu1  ;;  %v993_v47 = vpack.c.bf16 %v1960_v45, %v1959_v35  ;;  %v978_v48 = vpop.f32.mrb[31].mxu0 }
 0x2a3   : > { %v1095_v49 = vpack.c.bf16 %v1976_v46, %v1975_v38  ;;  %v1080_v50 = vpop.f32.mrb[31].mxu1  ;;  %v992_v51 = vpack.c.bf16 %v978_v48, %v975_v41 }
 0x2a4   : > { %v1094_v52 = vpack.c.bf16 %v1080_v50, %v1077_v44 }
 0x2a7   : > { %1429 = vmatmul.mubr.bf16.gmra.mrb[44].mxu0 %v789_v15  ;;  %1478 = vmatmul.mubr.bf16.gmra.mrb[36].mxu1 %v991_v27 }
 0x2a8   : > { %1485 = vmatprep.mubr.bf16.mxu1 %v1094_v52 }
 0x2af   : > { %1486 = vmatmul.mubr.bf16.gmra.mrb[40].mxu1 %v992_v51 }
 0x2b0   : > { %1493 = vmatprep.mubr.bf16.mxu1 %v1095_v49 }
 0x2b7   : > { %1494 = vmatmul.mubr.bf16.gmra.mrb[44].mxu1 %v993_v47 }
 0x362   : > { %v1849_v53 = vpop.f32.mrb[32].mxu0 }
 0x363   : > { %v1850_v54 = vpop.f32.mrb[33].mxu0 }
 0x364   : > { %v1851_v55 = vadd.f32 %v1850_v54, %v1849_v53  ;;  %v1852_v56 = vpop.f32.mrb[34].mxu0 }
 0x365   : > { %v1853_v57 = vpop.f32.mrb[35].mxu0 }
 0x366   : > { %v1854_v58 = vadd.f32 %v1853_v57, %v1852_v56 }
 0x36a   : > { %v1855_v59 = vpop.f32.mrb[36].mxu0 }
 0x36b   : > { %v1856_v60 = vpop.f32.mrb[37].mxu0 }
 0x36c   : > { %v1857_v61 = vadd.f32 %v1856_v60, %v1855_v59  ;;  %v1858_v62 = vpop.f32.mrb[38].mxu0 }
 0x36d   : > { %v1859_v63 = vpop.f32.mrb[39].mxu0 }
 0x36e   : > { %v1860_v0 = vadd.f32 %v1859_v63, %v1858_v62 }
 0x372   : > { %v1861_v1 = vpop.f32.mrb[40].mxu0  ;;  %v1889_v2 = vpop.f32.mrb[32].mxu1 }
 0x373   : > { %v1862_v3 = vpop.f32.mrb[41].mxu0  ;;  %v1890_v4 = vpop.f32.mrb[33].mxu1 }
 0x374   : > { %v1863_v5 = vadd.f32 %v1862_v3, %v1861_v1  ;;  %v1891_v6 = vadd.f32 %v1890_v4, %v1889_v2  ;;  %v1864_v7 = vpop.f32.mrb[42].mxu0  ;;  %v1892_v8 = vpop.f32.mrb[34].mxu1 }
 0x375   : > { %v1865_v9 = vpop.f32.mrb[43].mxu0  ;;  %v1893_v10 = vpop.f32.mrb[35].mxu1 }
 0x376   : > { %v1472_v11 = vadd.f32 %v1891_v6, %v1851_v55  ;;  %v1866_v12 = vadd.f32 %v1865_v9, %v1864_v7  ;;  %v1894_v13 = vadd.f32 %v1893_v10, %v1892_v8 }
 0x378   : > { %v1510_v14 = vadd.f32 %v1472_v11, %v2665_v29  ;;  %v1475_v15 = vadd.f32 %v1894_v13, %v1854_v58 }
 0x37a   : > { %1518 = vst [vmem:[%s2753_s21] sm:$0xff] %v1510_v14  ;;  %v1511_v16 = vadd.f32 %v1475_v15, %v2668_v30  ;;  %v1867_v17 = vpop.f32.mrb[44].mxu0  ;;  %v1895_v18 = vpop.f32.mrb[36].mxu1 }
 0x37b   : > { %v1868_v19 = vpop.f32.mrb[45].mxu0  ;;  %v1896_v20 = vpop.f32.mrb[37].mxu1 }
 0x37c   : > { %1519 = vst [vmem:[%s2753_s21 + $0x8] sm:$0xff] %v1511_v16  ;;  %v1869_v21 = vadd.f32 %v1868_v19, %v1867_v17  ;;  %v1897_v22 = vadd.f32 %v1896_v20, %v1895_v18  ;;  %v1870_v23 = vpop.f32.mrb[46].mxu0  ;;  %v1898_v29 = vpop.f32.mrb[38].mxu1 }
 0x37d   : > { %v1871_v24 = vpop.f32.mrb[47].mxu0  ;;  %v1899_v25 = vpop.f32.mrb[39].mxu1 }
 0x37e   : > { %v1480_v26 = vadd.f32 %v1897_v22, %v1857_v61  ;;  %v1872_v27 = vadd.f32 %v1871_v24, %v1870_v23  ;;  %v1900_v28 = vadd.f32 %v1899_v25, %v1898_v29 }
 0x380   : > { %v1512_v31 = vadd.f32 %v1480_v26, %v2673_v36  ;;  %v1483_v30 = vadd.f32 %v1900_v28, %v1860_v0 }
 0x382   : > { %1520 = vst [vmem:[%s2753_s21 + $0x10] sm:$0xff] %v1512_v31  ;;  %v1513_v32 = vadd.f32 %v1483_v30, %v2676_v37  ;;  %v1901_v33 = vpop.f32.mrb[40].mxu1 }
 0x383   : > { %v1902_v34 = vpop.f32.mrb[41].mxu1 }
 0x384   : > { %1521 = vst [vmem:[%s2753_s21 + $0x18] sm:$0xff] %v1513_v32  ;;  %v1903_v35 = vadd.f32 %v1902_v34, %v1901_v33  ;;  %v1904_v38 = vpop.f32.mrb[42].mxu1 }
 0x385   : > { %v1905_v41 = vpop.f32.mrb[43].mxu1 }
 0x386   : > { %v1488_v44 = vadd.f32 %v1903_v35, %v1863_v5  ;;  %v1906_v45 = vadd.f32 %v1905_v41, %v1904_v38 }
 0x388   : > { %v1514_v46 = vadd.f32 %v1488_v44, %v2682_v39  ;;  %v1491_v47 = vadd.f32 %v1906_v45, %v1866_v12 }
 0x38a   : > { %1522 = vst [vmem:[%s2753_s21 + $0x20] sm:$0xff] %v1514_v46  ;;  %v1515_v36 = vadd.f32 %v1491_v47, %v2685_v40  ;;  %v1907_v48 = vpop.f32.mrb[44].mxu1 }
 0x38b   : > { %v1908_v37 = vpop.f32.mrb[45].mxu1 }
 0x38c   : > { %1523 = vst [vmem:[%s2753_s21 + $0x28] sm:$0xff] %v1515_v36  ;;  %v1909_v49 = vadd.f32 %v1908_v37, %v1907_v48  ;;  %v1910_v50 = vpop.f32.mrb[46].mxu1 }
 0x38d   : > { %v1911_v51 = vpop.f32.mrb[47].mxu1 }
 0x38e   : > { %v1496_v52 = vadd.f32 %v1909_v49, %v1869_v21  ;;  %v1912_v53 = vadd.f32 %v1911_v51, %v1910_v50 }
 0x390   : > { %v1516_v39 = vadd.f32 %v1496_v52, %v2694_v42  ;;  %v1499_v54 = vadd.f32 %v1912_v53, %v1872_v27 }
 0x392   : > { %1524 = vst [vmem:[%s2753_s21 + $0x30] sm:$0xff] %v1516_v39  ;;  %v1517_v40 = vadd.f32 %v1499_v54, %v2697_v43 }
 0x394   : > { %1525 = vst [vmem:[%s2753_s21 + $0x38] sm:$0xff] %v1517_v40 }
 0x395   : > { %2283 = shalt.err (!%p2280_p7)
}
 0x396   : > { %s2284_s9 = scalar_lea.hbm %s2772_s0, 1024  ;;  %s2288_s5 = scalar_lea.hbm %s2830_s4, 2048 }
 0x397   : > { %p2285_p11 = scmp.ne.s32.totalorder %s2772_s0, %s2284_s9  ;;  %p2289_p12 = scmp.lt.u32.totalorder %s2772_s0, %s2830_s4 }
 0x398   : > { %p2290_p13 = scmp.lt.u32.totalorder %s2288_s5, %s2284_s9  ;;  %p2292_p1 = scmp.lt.u32.totalorder %s2284_s9, %s2772_s0 }
 0x399   : > { %p2286_p2 = pnand %p2285_p11, %p2854_p6 }
 0x39a   : > { %p2291_p0 = por %p2290_p13, %p2289_p12 }
 0x39b   : > { %p2287_p8 = pneg %p2286_p2 }
 0x39c   : > { %p2293_p10 = por %p2292_p1, %p2291_p0 }
 0x39e   : > { %p2294_p3 = pnand %p2293_p10, %p2287_p8 }
 0x3a0   : > { %2297 = shalt.err (!%p2294_p3)
}
 0x3a1   : > { %s2378_s3 = smov 128   ;;  %s2379_s25 = smov 8  }
 0x3a2   : > { %1989 = dma.vmem_to_hbm [thread:$0]  (%p2854_p6), %s2774_s14, 1024, %s2772_s0, %s1527_s11, %s2378_s3, %s2378_s3, %s2379_s25  }
 0x3a3 PF: > { %s1557_s12 = sand.u32 1, %s2344_s15   ;;  %p2855_p4 = scmp.ne.s32.totalorder %s2839_s24, 0 }
 0x3a4   : > { %p2856_p9 = scmp.ge.s32.totalorder %s2364_s20, 2  ;;  %s1558_s21 = scalar_lea.sflag [#allocation6], %s1557_s12 }
 0x3a6   : > { %p2006_p5 = pnand %p2856_p9, %p2855_p4 }
 0x3a8   : > { %2339 = dma.done.wait (!%p2006_p5), %s1558_s21, 1024  }
 0x3a9   : > { %2341 = vsyncadd (!%p2006_p5), %s1558_s21, 4294966272  ;;  %s24_s20 = sadd.s32 1, %s2364_s20   ;;  %s2857_s29 = sld [smem:[#allocation18_spill]] }
 0x3aa   : > { %p21_p7 = scmp.ge.s32.totalorder %s24_s20, 4   ;;  %s2858_s15 = smov %s2348_s16 }
 0x3ab   : > { %s2859_s16 = smov %s2352_s17  ;;  %s2860_s17 = smov %s2546_s7 }
 0x3ac   : > { %s2861_s18 = smov %s2360_s19  ;;  %23 = sbr.rel (!%p21_p7) target bundleno = 13 (0xd), region = 109 }
 0x3af   : > { %s2862_s19 = smov %s2857_s29 }
 0x3b3   :  { %1563 = vsyncpa [#allocation5], 1 }
 0x3b4   :  { %1565 = vsyncpa [#allocation5 + $0x1], 1 }
 0x3b5   :  { %1566 = vsyncpa [#allocation8], 1 }
 0x3b6   :  { %1568 = vsyncpa [#allocation8 + $0x1], 1 }
 0x3b7   :  { %1569 = vsyncpa [#allocation11], 1 }
 0x3b8   :  { %1570 = vsyncpa [#allocation6], 1 }
 0x3b9   :  { %1572 = vsyncpa [#allocation6 + $0x1], 1 }

</bundles_post_ra>
